<compile_context>
chip_gen: v6e
topology: v6e:2x2x1
jax: 0.10.0
libtpu: 0.0.40
codegen_flags: <defaults>
</compile_context>

<pallas_src>
import functools
import math

import jax
import jax.numpy as jnp
from jax import lax
from jax.experimental import pallas as pl
from jax.experimental.pallas import tpu as pltpu


def _bessel_kernel(edge_ref, out_ref, *, c: float, eps: float):
    # edge_ref: (1, TN) f32   lane-major tile of edge lengths
    # out_ref:  (TN, d)       Bessel embedding block (edge-major, matches [*, d])
    d = out_ref.shape[1]
    el = edge_ref[...]                                        # (1, TN)

    # Frequencies with 1/c pre-folded: (i+1) * pi / c, on the sublane axis.
    freq = (lax.broadcasted_iota(jnp.int32, (d, 1), 0).astype(jnp.float32)
            + 1.0) * jnp.float32(math.pi / c)                 # (d, 1)

    # Smooth distance cutoff, per edge only (N elements); 2/c folded in.
    # exp goes to the EUP slot -> essentially free next to the VPU sin work.
    wcut = 10.0 - jnp.float32(10.0 / c) * el                  # == 10*(1 - el/c)
    cutoff = jnp.where(
        wcut > 0.0,
        jnp.float32(2.0 / c) * jnp.exp(-1.0 / jnp.maximum(wcut, eps)),
        jnp.zeros_like(wcut),
    )                                                         # (1, TN)

    # Lane-dense compute (d on sublanes, N on 128 lanes), then one in-kernel
    # transpose per tile (XLU) so the HBM output is already [N, d].
    val = jnp.sin(freq * el) * cutoff                         # (d, TN) f32
    out_ref[...] = val.T.astype(out_ref.dtype)                # (TN, d)


def _choose_tile_n(n: int, d: int,
                   vmem_budget: int = 20 * 1024 * 1024,
                   max_tile: int = 1 << 16) -> int:
    """Pick a lane-tile size that maximizes per-step work under a VMEM budget.

    Conservative accounting: the narrow (tile_n, d) output block is assumed
    lane-padded to a multiple of 128 in VMEM and double-buffered; the input
    (1, tile_n) block is sublane-padded to 8 rows and double-buffered; the
    in-kernel (d, tile_n) value and its transpose are counted as temps.
    """
    padded_d = max(128, ((d + 127) // 128) * 128)
    bytes_per_lane = 2 * padded_d * 4 + 2 * 8 * 4 + 3 * d * 4
    t = vmem_budget // bytes_per_lane
    t = max(128, (min(t, max_tile) // 128) * 128)
    n128 = max(128, ((n + 127) // 128) * 128)
    t = min(t, n128)
    # Keep >= 2 grid blocks whenever possible so v7x's two TensorCores both
    # get work via the "parallel" grid axis.
    if t == n128 and n128 >= 256:
        t = max(128, ((n128 // 2) // 128) * 128)
    return int(t)


def bessel_basis(edge_len: jax.Array,
                 bessel_const: float,
                 d: int,
                 eps: float = 1e-4,
                 *,
                 out_dtype=jnp.float32,
                 tile_n: int | None = None) -> jax.Array:
    """Pallas implementation of BesselBasis.forward.

    edge_len: arbitrary-shaped f32 tensor [*,]
    returns:  tensor [*, d] (float32 by default; pass out_dtype=jnp.bfloat16
              to halve the dominant HBM write traffic if the consumer allows).
    """
    orig_shape = edge_len.shape
    flat = edge_len.reshape(-1).astype(jnp.float32)
    n = flat.shape[0]

    if tile_n is None:
        tile_n = _choose_tile_n(n, d)
    else:
        tile_n = max(128, (int(tile_n) // 128) * 128)

    n_pad = pl.cdiv(n, tile_n) * tile_n
    if n_pad != n:
        # Padding lanes are harmless: sin(0)=0, cutoff finite; sliced off below.
        # (Input traffic is only 4*N bytes, so this copy is low priority.)
        flat = jnp.pad(flat, (0, n_pad - n))
    edge_row = flat.reshape(1, n_pad)

    grid = (n_pad // tile_n,)
    kernel = functools.partial(_bessel_kernel,
                               c=float(bessel_const), eps=float(eps))

    out_bytes = jnp.dtype(out_dtype).itemsize * d * n_pad
    cost = pl.CostEstimate(
        flops=30 * d * n_pad,                  # sin polynomial + muls
        transcendentals=(d + 2) * n_pad,       # sin per element + exp/div per edge
        bytes_accessed=4 * n_pad + out_bytes,
    )

    out = pl.pallas_call(
        kernel,
        out_shape=jax.ShapeDtypeStruct((n_pad, d), out_dtype),
        grid_spec=pltpu.PrefetchScalarGridSpec(
            num_scalar_prefetch=0,
            grid=grid,
            in_specs=[pl.BlockSpec((1, tile_n), lambda i: (0, i))],
            out_specs=pl.BlockSpec((tile_n, d), lambda i: (i, 0)),
        ),
        compiler_params=pltpu.CompilerParams(
            dimension_semantics=("parallel",),
            vmem_limit_bytes=48 * 1024 * 1024,
        ),
        cost_estimate=cost,
    )(edge_row)

    if n_pad != n:
        out = out[:n]
    return out.reshape(*orig_shape, d)


def _reference(edge_len, bessel_const, d, eps=1e-4):
    weights = (jnp.linspace(1.0, float(d), d, dtype=jnp.float32)
               * jnp.float32(math.pi))
    ret = 2.0 / bessel_const * jnp.sin(
        weights * edge_len[..., None] / bessel_const)
    w = 10.0 * (1.0 - edge_len / bessel_const)
    cutoff = jnp.where(w > 0, jnp.exp(-1.0 / jnp.maximum(w, eps)), 0.0)
    return ret * cutoff[..., None]


if __name__ == "__main__":
    key = jax.random.PRNGKey(0)
    bessel_const = 10.0
    d = 16
    eps = 1e-4

    # Case 1: edge_len [*,] with * = (3, 100) -> output (3, 100, d).
    # n = 300 -> auto tile picks 128 lanes -> 3 grid blocks, padded to 384
    # (exercises tiling + padding + slice paths).
    k1, k2 = jax.random.split(key)
    edge_len = jax.random.uniform(k1, (3, 100), dtype=jnp.float32,
                                  minval=0.0, maxval=15.0)
    out = jax.block_until_ready(bessel_basis(edge_len, bessel_const, d, eps))
    ref = _reference(edge_len, bessel_const, d, eps)
    assert out.shape == (3, 100, d), out.shape
    assert jnp.allclose(out, ref, atol=2e-5, rtol=1e-5), \
        float(jnp.max(jnp.abs(out - ref)))

    # Case 2: n = 256 exactly -> no padding, >=2 blocks (megacore path).
    edge_len2 = jax.random.uniform(k2, (256,), dtype=jnp.float32,
                                   minval=0.0, maxval=15.0)
    out2 = jax.block_until_ready(bessel_basis(edge_len2, bessel_const, d, eps))
    ref2 = _reference(edge_len2, bessel_const, d, eps)
    assert out2.shape == (256, d), out2.shape
    assert jnp.allclose(out2, ref2, atol=2e-5, rtol=1e-5), \
        float(jnp.max(jnp.abs(out2 - ref2)))

    print("KERNEL_OK")
</pallas_src>

<mosaic_0001>
module attributes {stable_mosaic.version = 11 : i64} {
  func.func @_bessel_kernel(%arg0: i32, %arg1: memref<1x128xf32, #tpu.memory_space<vmem>>, %arg2: memref<128x16xf32, #tpu.memory_space<vmem>>) attributes {dimension_semantics = [#tpu.dimension_semantics<parallel>], iteration_bounds = array<i64: 3>, scalar_prefetch = 0 : i64, scratch_operands = 0 : i64, tpu.core_type = #tpu.core_type<tc>, window_params = [{transform_indices = @transform_0, window_bounds = array<i64: 1, 128>}, {transform_indices = @transform_1, window_bounds = array<i64: 128, 16>}]} {
    %c0 = arith.constant 0 : index
    %c0_0 = arith.constant 0 : index
    %0 = vector.load %arg1[%c0, %c0_0] : memref<1x128xf32, #tpu.memory_space<vmem>>, vector<1x128xf32>
    %1 = tpu.iota {dimensions = array<i32: 0>} : vector<16x1xi32>
    %2 = arith.sitofp %1 : vector<16x1xi32> to vector<16x1xf32>
    %cst = arith.constant 1.000000e+00 : f32
    %3 = vector.broadcast %cst : f32 to vector<16x1xf32>
    %4 = arith.addf %2, %3 : vector<16x1xf32>
    %cst_1 = arith.constant 0.314159274 : f32
    %5 = vector.broadcast %cst_1 : f32 to vector<16x1xf32>
    %6 = arith.mulf %4, %5 : vector<16x1xf32>
    %cst_2 = arith.constant 1.000000e+00 : f32
    %7 = vector.broadcast %cst_2 : f32 to vector<1x128xf32>
    %8 = arith.mulf %7, %0 : vector<1x128xf32>
    %cst_3 = arith.constant 1.000000e+01 : f32
    %9 = vector.broadcast %cst_3 : f32 to vector<1x128xf32>
    %10 = arith.subf %9, %8 : vector<1x128xf32>
    %cst_4 = arith.constant 0.000000e+00 : f32
    %11 = vector.broadcast %cst_4 : f32 to vector<1x128xf32>
    %12 = arith.cmpf ogt, %10, %11 : vector<1x128xf32>
    %cst_5 = arith.constant 9.99999974E-5 : f32
    %13 = vector.broadcast %cst_5 : f32 to vector<1x128xf32>
    %14 = arith.maximumf %10, %13 : vector<1x128xf32>
    %cst_6 = arith.constant -1.000000e+00 : f32
    %15 = vector.broadcast %cst_6 : f32 to vector<1x128xf32>
    %16 = arith.divf %15, %14 : vector<1x128xf32>
    %17 = math.exp %16 : vector<1x128xf32>
    %cst_7 = arith.constant 2.000000e-01 : f32
    %18 = vector.broadcast %cst_7 : f32 to vector<1x128xf32>
    %19 = arith.mulf %18, %17 : vector<1x128xf32>
    %cst_8 = arith.constant 0.000000e+00 : f32
    %20 = vector.broadcast %cst_8 : f32 to vector<1x128xf32>
    %21 = arith.select %12, %19, %20 : vector<1x128xi1>, vector<1x128xf32>
    %22 = vector.broadcast %6 : vector<16x1xf32> to vector<16x128xf32>
    %23 = vector.broadcast %0 : vector<1x128xf32> to vector<16x128xf32>
    %24 = arith.mulf %22, %23 : vector<16x128xf32>
    %25 = math.sin %24 : vector<16x128xf32>
    %26 = vector.broadcast %21 : vector<1x128xf32> to vector<16x128xf32>
    %27 = arith.mulf %25, %26 : vector<16x128xf32>
    %28 = tpu.transpose %27, [1, 0] : vector<16x128xf32> -> vector<128x16xf32>
    %c0_9 = arith.constant 0 : index
    %c0_10 = arith.constant 0 : index
    %29 = vector.load %arg2[%c0_9, %c0_10] : memref<128x16xf32, #tpu.memory_space<vmem>>, vector<128x16xf32>
    tpu.vector_store %arg2[%c0_9, %c0_10], %28 {strides = array<i32>} : memref<128x16xf32, #tpu.memory_space<vmem>>, vector<128x16xf32>,
    return
  }
  func.func @transform_0(%arg0: i32) -> (i32, i32) {
    %c0_i32 = arith.constant 0 : i32
    %c0_i32_0 = arith.constant 0 : i32
    return %c0_i32, %arg0 : i32, i32
  }
  func.func @transform_1(%arg0: i32) -> (i32, i32) {
    %c0_i32 = arith.constant 0 : i32
    %c0_i32_0 = arith.constant 0 : i32
    return %arg0, %c0_i32 : i32, i32
  }
}

</mosaic_0001>

<bundles_post_ra>
// kernel: tpu_custom_call.1
= control target key start
LH: loop header
LB: loop body
LE: loop exit
PB: predicated region body
PF: predicated region fallthrough
CT: control target
= control target key end

     0   :  { %6 = vsyncpa [#allocation3], 0  ;;  %s894_s0 = inlined_call_operand.hbm [shape: f32[1,384], index: 0, kind: input, shape index: {}]   ;;  %s895_s1 = inlined_call_operand.vmem [shape: f32[384,16], index: 1, kind: output, shape index: {}]  }
   0x1   :  { %8 = vsyncpa [#allocation3 + $0x1], 0  ;;  %s653_s6 = smov 0   ;;  %s655_s7 = smov 0  }
   0x2   :  { %s657_s8 = smov 0   ;;  %s659_s9 = smov 0  }
   0x3 LB: > { %s488_s10 = sadd.s32 4294967295, %s634_s9   ;;  %s673_s11 = sadd.s32 1, %s634_s9   ;;  %s634_s9 = sphi %s659_s9, %s909_s9   ;;  %s630_s8 = sphi %s657_s8, %s908_s8   ;;  %s626_s7 = sphi %s655_s7, %s907_s7   ;;  %s622_s6 = sphi %s653_s6, %s906_s6  }
   0x4   : > { %s18_s12 = ssub.s32 %s634_s9, %s673_s11  ;;  %s21_s13 = sadd.s32 1, %s630_s8 }
   0x5   : > { %p19_p0 = scmp.eq.s32.totalorder %s18_s12, 0  ;;  %p28_p1 = scmp.ne.s32.totalorder %s630_s8, %s626_s7 }
   0x6   : > { %p29_p2 = scmp.eq.s32.totalorder %s634_s9, 0  ;;  %p34_p3 = scmp.ne.s32.totalorder %s626_s7, %s622_s6 }
   0x7   : > { %s683_s14 = scalar_select %p19_p0, %s630_s8, %s21_s13  }
   0x8   : > { %p30_p4 = por %p29_p2, %p28_p1  ;;  %p35_p5 = scmp.eq.s32.totalorder %s488_s10, 0 }
   0x9   : > { %p520_p6 = scmp.lt.s32.totalorder %s634_s9, 3  ;;  %s84_s16 = sand.u32 1, %s630_s8  }
   0xa   : > { %p688_p7 = por %p35_p5, %p34_p3  ;;  %s492_s17 = sshll.u32 %s634_s9, 4 }
   0xb   : > { %s87_s18 = scalar_lea.vmem [#allocation2], %s84_s16  ;;  %s697_s22 = scalar_lea.hbm %s894_s0, %s492_s17 }
   0xc   : > { %s897_s15 = scalar_select %p688_p7, 1, 0 }
   0xd   : > { %s94_s19 = sshll.u32 %s87_s18, 4  ;;  %p701_p8 = pnand %p520_p6, %p30_p4  ;;  %s699_s19 = int_to_ptr.vmem [resolvable:$true] %s94_s19 }
   0xe   : > { %s85_s24 = scalar_lea.sflag [#allocation3], %s84_s16  ;;  %s572_s25 = scalar_lea.hbm %s697_s22, 16 }
   0xf   : > { %p573_p11 = scmp.ne.s32.totalorder %s697_s22, %s572_s25  ;;  %p574_p12 = pneg %p701_p8 }
  0x10   : > { %s577_s28 = scalar_lea.hbm %s894_s0, 48  ;;  %p578_p1 = scmp.lt.s32.totalorder %s697_s22, %s894_s0 }
  0x11   : > { %p575_p13 = pnand %p574_p12, %p573_p11  ;;  %p579_p2 = scmp.lt.s32.totalorder %s577_s28, %s572_s25 }
  0x13   : > { %p576_p0 = pneg %p575_p13  ;;  %p580_p3 = por %p579_p2, %p578_p1 }
  0x15   : > { %p581_p4 = pnand %p580_p3, %p576_p0 }
  0x17   : > { %584 = shalt.err (!%p581_p4)
}
  0x18   : > { %s585_s2 = scalar_lea.vmem %s699_s19, 16  ;;  %s636_s3 = smov [#allocation2]  }
  0x19   : > { %p586_p5 = scmp.ne.s32.totalorder %s699_s19, %s585_s2  ;;  %s590_s4 = sshll.u32 %s636_s3, 4  ;;  %s591_s4 = int_to_ptr.vmem [resolvable:$false] %s590_s4 }
  0x1a   : > { %s592_s5 = scalar_lea.vmem %s591_s4, 32  ;;  %p593_p13 = scmp.lt.s32.totalorder %s699_s19, %s591_s4 }
  0x1b   : > { %p588_p6 = pnand %p586_p5, %p574_p12  ;;  %p594_p9 = scmp.lt.s32.totalorder %s592_s5, %s585_s2 }
  0x1d   : > { %p589_p11 = pneg %p588_p6  ;;  %p595_p10 = por %p594_p9, %p593_p13 }
  0x1f   : > { %p596_p7 = pnand %p595_p10, %p589_p11 }
  0x21   : > { %599 = shalt.err (!%p596_p7)
}
  0x22   : > { %519 = dma.hbm_to_vmem [thread:$0]  (!%p701_p8), %s697_s22, 16, %s699_s19, %s85_s24  }
  0x23   : > { %p899_p0 = scmp.lt.s32.totalorder %s634_s9, 4  ;;  %p900_p1 = scmp.ge.s32.totalorder %s634_s9, 1 }
  0x25   : > { %p100_p12 = pnand %p900_p1, %p899_p0 }
  0x26   : > { %s105_s6 = sand.u32 (!%p100_p12), 1, %s626_s7   ;;  %p901_p2 = scmp.ne.s32.totalorder (!%p100_p12), %s897_s15, 0 }
  0x27   : > { %103 = sbr.rel (%p100_p12) target bundleno = 334 (0x14e), region = 24  ;;  %s106_s12 = scalar_lea.sflag (!%p100_p12), [#allocation3], %s105_s6 }
  0x28   : > { %s108_s13 = scalar_lea.vmem (!%p100_p12), [#allocation2], %s105_s6 }
  0x2c   : > { %617 = dma.done.wait (%p901_p2), %s106_s12, 16  }
  0x2d   : > { %619 = vsyncadd (%p901_p2), %s106_s12, 4294967280  ;;  %v133_v0 = vlaneseq  ;;  %v739_v7 = vld [vmem:[%s108_s13] sm:$0x1]  ;;  %v637_v34 = vmov 683565275   ;;  %s494_s15 = sshll.u32 %s488_s10, 4 }
  0x2e   : > { %v142_v29 = vsub.f32 10.0, %v739_v7  ;;  %v638_v36 = vmov 2475754826   ;;  %v639_v38 = vmov 2131351028   ;;  %p127_p7 = scmp.lt.s32.totalorder %s494_s15, 47 }
  0x2f   : > { %v734_v1 = vshrl.u32 %v133_v0, 7  ;;  %v640_v40 = vmov 2102212464   ;;  %v641_v42 = vmov 920167782  }
  0x30   : > { %v642_v51 = vmov 1326507024   ;;  %s911_s15 = smov (!%p127_p7, %s494_s15), 47 }
  0x31   : > { %v135_v2 = vadd.s32 8, %v734_v1  ;;  %v136_v3 = vcvt.s32.f32 %v734_v1  ;;  %v154_v4 = vsub.s32 0, %v734_v1  ;;  %s495_s16 = sshll.u32 %s911_s15, 3 }
  0x32   : > { %s847_s19 = scalar_lea.vmem %s895_s1, %s495_s16 }
  0x33   : > { %v137_v5 = vcvt.s32.f32 %v135_v2  ;;  %v138_v6 = vadd.f32 1.0, %v136_v3  ;;  %v155_v10 = vrot.slane %v739_v7, %v154_v4 }
  0x35   : > { %v139_v8 = vadd.f32 1.0, %v137_v5  ;;  %v140_v9 = vmul.f32 0.31415927, %v138_v6 }
  0x37   : > { %v141_v11 = vmul.f32 0.31415927, %v139_v8  ;;  %v744_v12 = vmul.f32 %v155_v10, %v140_v9 }
  0x39   : > { %v746_v13 = vmul.f32 %v155_v10, %v141_v11  ;;  %v159_v14 = vand.u32 2147483647, %v744_v12  ;;  %v162_v15 = vand.u32 2139095040, %v744_v12  ;;  %vm161_vm14 = vcmp.lt.s32.totalorder %v744_v12, 0 }
  0x3b   : > { %v266_v16 = vand.u32 2139095040, %v746_v13  ;;  %v163_v17 = vshrl.u32 %v162_v15, 23  ;;  %v166_v18 = vand.u32 8388607, %v159_v14  ;;  %v263_v22 = vand.u32 2147483647, %v746_v13 }
  0x3c   : > { %vm160_vm15 = vcmp.le.f32.partialorder %v159_v14, 0.7853982 }
  0x3d   : > { %v267_v19 = vshrl.u32 %v266_v16, 23  ;;  %v496_v20 = vadd.s32 4294967169, %v163_v17  ;;  %v167_v24 = vor.u32 8388608, %v166_v18  ;;  %v756_v27 = vand.u32 8388607, %v263_v22 }
  0x3f   : > { %v500_v21 = vadd.s32 4294967169, %v267_v19  ;;  %v169_v23 = vadd.s32 1, %v496_v20  ;;  %v759_v31 = vshll.u32 %v167_v24, 8  ;;  %v271_v45 = vor.u32 8388608, %v756_v27 }
  0x41   : > { %v273_v25 = vadd.s32 1, %v500_v21  ;;  %vm170_vm0 = vcmp.gt.s32.totalorder %v169_v23, 0 }
  0x42   : > { %v171_v26 = vsel %vm170_vm0, %v169_v23, 0  ;;  %vm265_vm0 = vcmp.lt.s32.totalorder %v746_v13, 0 }
  0x43   : > { %vm274_vm1 = vcmp.gt.s32.totalorder %v273_v25, 0  ;;  %v173_v28 = vand.u32 31, %v171_v26  ;;  %v172_v30 = vshrl.u32 %v171_v26, 5 }
  0x44   : > { %v275_v32 = vsel %vm274_vm1, %v273_v25, 0  ;;  %vm821_vm1 = vcmp.le.f32.partialorder %v263_v22, 0.7853982 }
  0x45   : > { %v174_v33 = vsub.s32 32, %v173_v28  ;;  %v176_v35 = vshll.u32 %v637_v34, %v173_v28  ;;  %v179_v37 = vshll.u32 %v638_v36, %v173_v28  ;;  %v182_v39 = vshll.u32 %v639_v38, %v173_v28 }
  0x46   : > { %v185_v41 = vshll.u32 %v640_v40, %v173_v28  ;;  %v188_v43 = vshll.u32 %v641_v42, %v173_v28  ;;  %v761_v44 = vshrl.u32 %v275_v32, 5  ;;  %vm191_vm2 = vcmp.lt.s32.totalorder %v172_v30, 1 }
  0x47   : > { %v175_v46 = vshrl.u32 %v637_v34, %v174_v33  ;;  %v177_v47 = vshrl.u32 %v638_v36, %v174_v33  ;;  %v180_v48 = vshrl.u32 %v639_v38, %v174_v33  ;;  %v183_v49 = vshrl.u32 %v640_v40, %v174_v33 }
  0x48   : > { %v186_v50 = vshrl.u32 %v641_v42, %v174_v33  ;;  %v189_v52 = vshrl.u32 %v642_v51, %v174_v33  ;;  %v277_v53 = vand.u32 31, %v275_v32  ;;  %vm192_vm3 = vcmp.lt.s32.totalorder %v172_v30, 2 }
  0x49   : > { %v178_v54 = vor.u32 %v177_v47, %v176_v35  ;;  %v181_v55 = vor.u32 %v180_v48, %v179_v37  ;;  %v184_v56 = vor.u32 %v183_v49, %v182_v39  ;;  %vm193_vm4 = vcmp.lt.s32.totalorder %v172_v30, 3 }
  0x4a   : > { %v187_v57 = vor.u32 %v186_v50, %v185_v41  ;;  %v190_v58 = vor.u32 %v189_v52, %v188_v43  ;;  %vm194_vm5 = vcmp.lt.s32.totalorder %v172_v30, 4  ;;  %v278_v3 = vsub.s32 32, %v277_v53 }
  0x4b   : > { %v195_v59 = vsel %vm191_vm2, %v175_v46, %v178_v54  ;;  %v196_v60 = vsel %vm194_vm5, %v184_v56, 2102212464  ;;  %v199_v61 = vsel %vm191_vm2, %v178_v54, %v181_v55  ;;  %v203_v62 = vsel %vm191_vm2, %v181_v55, %v184_v56 }
  0x4c   : > { %v197_v63 = vsel %vm193_vm4, %v181_v55, %v196_v60  ;;  %v200_v0 = vsel %vm194_vm5, %v187_v57, 920167782  ;;  %v204_v2 = vsel %vm194_vm5, %v190_v58, 1326507024  ;;  %v280_v9 = vshll.u32 %v637_v34, %v277_v53 }
  0x4d   : > { %v198_v5 = vsel %vm192_vm3, %v195_v59, %v197_v63  ;;  %v201_v6 = vsel %vm193_vm4, %v184_v56, %v200_v0  ;;  %v205_v8 = vsel %vm193_vm4, %v187_v57, %v204_v2  ;;  %v279_v16 = vshrl.u32 %v637_v34, %v278_v3 }
  0x4e   : > { %v202_v10 = vsel %vm192_vm3, %v199_v61, %v201_v6  ;;  %v206_v11 = vsel %vm192_vm3, %v203_v62, %v205_v8  ;;  %v214_v15 = vmul.u32 %v759_v31, %v198_v5  ;;  %v281_v21 = vshrl.u32 %v638_v36, %v278_v3 }
  0x4f   : > { %v769_v17 = vmul.u32.u64.low %v759_v31, %v206_v11  ;;  %v770_v18 = vmul.u32.u64.high %v759_v31, %v206_v11, %v769_v17  ;;  %v773_v19 = vmul.u32.u64.low %v759_v31, %v202_v10  ;;  %v774_v20 = vmul.u32.u64.high %v759_v31, %v202_v10, %v773_v19 }
  0x50   : > { %v283_v23 = vshll.u32 %v638_v36, %v277_v53  ;;  %v284_v24 = vshrl.u32 %v639_v38, %v278_v3  ;;  %v286_v25 = vshll.u32 %v639_v38, %v277_v53  ;;  %v287_v26 = vshrl.u32 %v640_v40, %v278_v3 }
  0x51   : > { %v289_v27 = vshll.u32 %v640_v40, %v277_v53  ;;  %v290_v28 = vshrl.u32 %v641_v42, %v278_v3  ;;  %v292_v30 = vshll.u32 %v641_v42, %v277_v53  ;;  %v282_v32 = vor.u32 %v281_v21, %v280_v9 }
  0x52   : > { %v285_v33 = vor.u32 %v284_v24, %v283_v23  ;;  %v293_v35 = vshrl.u32 %v642_v51, %v278_v3  ;;  %vm295_vm6 = vcmp.lt.s32.totalorder %v761_v44, 1  ;;  %v144_v34 = vmax.f32 %v142_v29, 0.0001 }
  0x53   : > { %vm216_vm7 = vc.u32 %v770_v18, %v773_v19  ;;  %v217_v31 = vadd.s32 1, %v774_v20  ;;  %v288_v37 = vor.u32 %v287_v26, %v286_v25  ;;  %v291_v36 = vor.u32 %v290_v28, %v289_v27 }
  0x54   : > { %v294_v39 = vor.u32 %v293_v35, %v292_v30  ;;  %vm297_vm8 = vcmp.lt.s32.totalorder %v761_v44, 3  ;;  %v311_v38 = vshll.u32 %v271_v45, 8  ;;  %vm296_vm9 = vcmp.lt.s32.totalorder %v761_v44, 2 }
  0x55   : > { %v218_v40 = vsel %vm216_vm7, %v217_v31, %v774_v20  ;;  %vm298_vm10 = vcmp.lt.s32.totalorder %v761_v44, 4  ;;  %v303_v41 = vsel %vm295_vm6, %v282_v32, %v285_v33  ;;  %v299_v43 = vsel %vm295_vm6, %v279_v16, %v282_v32 }
  0x56   : > { %v219_v42 = vadd.s32 %v218_v40, %v214_v15  ;;  %v300_v46 = vsel %vm298_vm10, %v288_v37, 2102212464  ;;  %v304_v47 = vsel %vm298_vm10, %v291_v36, 920167782  ;;  %v307_v49 = vsel %vm295_vm6, %v285_v33, %v288_v37 }
  0x57   : > { %v301_v48 = vsel %vm297_vm8, %v285_v33, %v300_v46  ;;  %v305_v45 = vsel %vm297_vm8, %v288_v37, %v304_v47  ;;  %v308_v50 = vsel %vm298_vm10, %v294_v39, 1326507024  ;;  %560 = vrcp.f32 %v144_v34 }
  0x58   : > { %v220_v51 = vadd.s32 536870912, %v219_v42  ;;  %v306_v52 = vsel %vm296_vm9, %v303_v41, %v305_v45  ;;  %v309_v53 = vsel %vm297_vm8, %v291_v36, %v308_v50  ;;  %v302_v57 = vsel %vm296_vm9, %v299_v43, %v301_v48 }
  0x59   : > { %v799_v54 = vmul.u32.u64.low %v311_v38, %v306_v52  ;;  %v800_v55 = vmul.u32.u64.high %v311_v38, %v306_v52, %v799_v54  ;;  %v310_v58 = vsel %vm296_vm9, %v307_v49, %v309_v53  ;;  %v318_v62 = vmul.u32 %v311_v38, %v302_v57 }
  0x5a   : > { %v221_v56 = vshrl.u32 %v220_v51, 30  ;;  %v806_v59 = vmul.u32.u64.low %v311_v38, %v310_v58  ;;  %v807_v60 = vmul.u32.u64.high %v311_v38, %v310_v58, %v806_v59  ;;  %v215_v16 = vadd.s32 %v773_v19, %v770_v18 }
  0x5b   : > { %v321_v63 = vadd.s32 1, %v800_v55  ;;  %vm827_vm2 = vcmp.gt.f32.partialorder %v142_v29, 0.0  ;;  %vm251_vm6 = vweird.f32 %v744_v12  ;;  %vm355_vm10 = vweird.f32 %v746_v13 }
  0x5c   : > { %v222_v61 = vshll.u32 %v221_v56, 30  ;;  %vm320_vm11 = vc.u32 %v807_v60, %v799_v54  ;;  %v319_v18 = vadd.s32 %v799_v54, %v807_v60  ;;  %v245_v40 = vsub.s32 4, %v221_v56 }
  0x5d   : > { %v322_v3 = vsel %vm320_vm11, %v321_v63, %v800_v55  ;;  %vm407_vm11 = vcmask 130048  }
  0x5e   : > { %v223_v0 = vsub.s32 %v219_v42, %v222_v61  ;;  %v323_v5 = vadd.s32 %v322_v3, %v318_v62  ;;  %v246_v49 = vsel %vm161_vm14, %v245_v40, %v221_v56 }
  0x5f   : > { %v248_v55 = vsel %vm160_vm15, 0, %v246_v49 }
  0x60   : > { %v225_v2 = vsub.s32 0, %v223_v0  ;;  %v324_v8 = vadd.s32 536870912, %v323_v5  ;;  %v252_v58 = vadd.s32 3, %v248_v55 }
  0x62   : > { %v497_v6 = vmin.u32 %v225_v2, %v223_v0  ;;  %v325_v44 = vshrl.u32 %v324_v8, 30  ;;  %v253_v63 = vand.u32 3, %v252_v58 }
  0x64   : > { %v227_v9 = vclz %v497_v6  ;;  %v326_v11 = vshll.u32 %v325_v44, 30  ;;  %v561_v15 = vpop.eup %560  ;;  %v349_v14 = vsub.s32 4, %v325_v44  ;;  %vm258_vm3 = vcmp.eq.s32.totalorder %v253_v63, 2 }
  0x65   : > { %v146_v25 = vmul.f32 -1.0, %v561_v15  ;;  %vm255_vm4 = vcmp.eq.s32.totalorder %v253_v63, 0  ;;  %vm254_vm5 = vcmp.lt.s32.totalorder %v253_v63, 2 }
  0x66   : > { %v498_v10 = vadd.s32 4294967294, %v227_v9  ;;  %v327_v20 = vsub.s32 %v323_v5, %v326_v11  ;;  %v350_v3 = vsel %vm265_vm0, %v349_v14, %v325_v44 }
  0x67   : > { %v147_v35 = vmul.f32 1.442695, %v146_v25  ;;  %v352_v8 = vsel %vm821_vm1, 0, %v350_v3 }
  0x68   : > { %vm499_vm12 = vcmp.lt.s32.totalorder %v498_v10, 0  ;;  %v329_v26 = vsub.s32 0, %v327_v20  ;;  %v356_v11 = vadd.s32 3, %v352_v8 }
  0x69   : > { %v230_v17 = vsel %vm499_vm12, 0, %v498_v10  ;;  %562 = vpow2.f32 %v147_v35 }
  0x6a   : > { %v231_v21 = vsub.s32 32, %v230_v17  ;;  %v232_v23 = vshll.u32 %v223_v0, %v230_v17  ;;  %v235_v24 = vsub.s32 4294967266, %v230_v17  ;;  %v501_v30 = vmin.u32 %v329_v26, %v327_v20 }
  0x6c   : > { %v233_v27 = vshrl.u32 %v215_v16, %v231_v21  ;;  %v236_v28 = vadd.s32 127, %v235_v24  ;;  %v331_v34 = vclz %v501_v30  ;;  %v357_v21 = vand.u32 3, %v356_v11 }
  0x6e   : > { %v234_v32 = vor.u32 %v233_v27, %v232_v23  ;;  %v237_v33 = vshll.u32 %v236_v28, 23  ;;  %v502_v36 = vadd.s32 4294967294, %v331_v34  ;;  %vm362_vm7 = vcmp.eq.s32.totalorder %v357_v21, 2 }
  0x6f   : > { %vm359_vm8 = vcmp.eq.s32.totalorder %v357_v21, 0  ;;  %vm358_vm9 = vcmp.lt.s32.totalorder %v357_v21, 2 }
  0x70   : > { %v238_v31 = vor.u32 4788187, %v237_v33  ;;  %v241_v37 = vcvt.s32.f32 %v234_v32  ;;  %vm503_vm13 = vcmp.lt.s32.totalorder %v502_v36, 0 }
  0x71   : > { %v334_v38 = vsel %vm503_vm13, 0, %v502_v36 }
  0x72   : > { %v239_v39 = vand.u32 2147483647, %v238_v31  ;;  %v335_v41 = vsub.s32 32, %v334_v38  ;;  %v336_v42 = vshll.u32 %v327_v20, %v334_v38  ;;  %v339_v43 = vsub.s32 4294967266, %v334_v38 }
  0x74   : > { %v242_v19 = vmul.f32 %v241_v37, %v239_v39  ;;  %v337_v47 = vshrl.u32 %v319_v18, %v335_v41  ;;  %v340_v48 = vadd.s32 127, %v339_v43 }
  0x76   : > { %v243_v46 = vxor.u32 2147483648, %v242_v19  ;;  %v338_v51 = vor.u32 %v337_v47, %v336_v42  ;;  %v341_v52 = vshll.u32 %v340_v48, 23  ;;  %v563_v60 = vpop.eup %562 }
  0x77   : > { %v149_v62 = vmul.f32 0.2, %v563_v60 }
  0x78   : > { %v244_v45 = vsel %vm161_vm14, %v243_v46, %v242_v19  ;;  %v342_v53 = vor.u32 4788187, %v341_v52  ;;  %v345_v54 = vcvt.s32.f32 %v338_v51 }
  0x79   : > { %v247_v50 = vsel %vm160_vm15, %v744_v12, %v244_v45  ;;  %v150_v6 = vsel %vm827_vm2, %v149_v62, 0.0 }
  0x7a   : > { %564 = vcosq.f32 %v247_v50  ;;  %v343_v57 = vand.u32 2147483647, %v342_v53  ;;  %v371_v10 = vrot.slane %v150_v6, %v154_v4 }
  0x7b   : > { %566 = vsinq.f32 %v247_v50 }
  0x7c   : > { %v346_v59 = vmul.f32 %v345_v54, %v343_v57 }
  0x7e   : > { %v347_v61 = vxor.u32 2147483648, %v346_v59 }
  0x80   : > { %v348_v0 = vsel %vm265_vm0, %v347_v61, %v346_v59 }
  0x81   : > { %v351_v5 = vsel %vm821_vm1, %v746_v13, %v348_v0 }
  0x82   : > { %568 = vcosq.f32 %v351_v5 }
  0x83   : > { %570 = vsinq.f32 %v351_v5 }
  0x87   : > { %v565_v22 = vpop.eup %564 }
  0x88   : > { %v567_v7 = vpop.eup %566  ;;  %v259_v29 = vxor.u32 2147483648, %v565_v22 }
  0x89   : > { %v256_v9 = vxor.u32 2147483648, %v567_v7 }
  0x8a   : > { %v260_v44 = vsel %vm258_vm3, %v259_v29, %v567_v7 }
  0x8b   : > { %v257_v15 = vsel %vm255_vm4, %v565_v22, %v256_v9 }
  0x8c   : > { %v261_v16 = vsel %vm254_vm5, %v257_v15, %v260_v44 }
  0x8d   : > { %v262_v17 = vsel %vm251_vm6, nan, %v261_v16 }
  0x8e   : > { %v373_v20 = vmul.f32 %v371_v10, %v262_v17 }
  0x8f   : > { %v569_v23 = vpop.eup %568 }
  0x90   : > { %375 = vxpose.xlu0.b32.start [1/2] (short) %v373_v20, 128  ;;  %v571_v24 = vpop.eup %570  ;;  %v363_v25 = vxor.u32 2147483648, %v569_v23 }
  0x91   : > { %v360_v26 = vxor.u32 2147483648, %v571_v24 }
  0x92   : > { %v364_v12 = vsel %vm362_vm7, %v363_v25, %v571_v24 }
  0x93   : > { %v361_v1 = vsel %vm359_vm8, %v569_v23, %v360_v26 }
  0x94   : > { %v365_v4 = vsel %vm358_vm9, %v361_v1, %v364_v12 }
  0x95   : > { %v366_v27 = vsel %vm355_vm10, nan, %v365_v4 }
  0x96   : > { %v374_v28 = vmul.f32 %v371_v10, %v366_v27 }
  0x98   : > { %376 = vxpose.xlu0.b32.end [2/2] (short) %v374_v28, 128 }
 0x110   : > { %v391_v13 = vpop.trf.xlu0 }
 0x111   : > { %408 = vst.msk [vmem:[%s847_s19] sm:$0xff] %vm407_vm11, %v391_v13 }
 0x114   : > { %v392_v30 = vpop.trf.xlu0 }
 0x115   : > { %409 = vst.msk [vmem:[%s847_s19 + $0x8] sm:$0xff] %vm407_vm11, %v392_v30 }
 0x118   : > { %v393_v32 = vpop.trf.xlu0 }
 0x119   : > { %410 = vst.msk [vmem:[%s847_s19 + $0x10] sm:$0xff] %vm407_vm11, %v393_v32 }
 0x11c   : > { %v394_v33 = vpop.trf.xlu0 }
 0x11d   : > { %411 = vst.msk [vmem:[%s847_s19 + $0x18] sm:$0xff] %vm407_vm11, %v394_v33 }
 0x120   : > { %v395_v35 = vpop.trf.xlu0 }
 0x121   : > { %412 = vst.msk [vmem:[%s847_s19 + $0x20] sm:$0xff] %vm407_vm11, %v395_v35 }
 0x124   : > { %v396_v34 = vpop.trf.xlu0 }
 0x125   : > { %413 = vst.msk [vmem:[%s847_s19 + $0x28] sm:$0xff] %vm407_vm11, %v396_v34 }
 0x128   : > { %v397_v31 = vpop.trf.xlu0 }
 0x129   : > { %414 = vst.msk [vmem:[%s847_s19 + $0x30] sm:$0xff] %vm407_vm11, %v397_v31 }
 0x12c   : > { %v398_v37 = vpop.trf.xlu0 }
 0x12d   : > { %415 = vst.msk [vmem:[%s847_s19 + $0x38] sm:$0xff] %vm407_vm11, %v398_v37 }
 0x130   : > { %v399_v36 = vpop.trf.xlu0 }
 0x131   : > { %416 = vst.msk [vmem:[%s847_s19 + $0x40] sm:$0xff] %vm407_vm11, %v399_v36 }
 0x134   : > { %v400_v39 = vpop.trf.xlu0 }
 0x135   : > { %417 = vst.msk [vmem:[%s847_s19 + $0x48] sm:$0xff] %vm407_vm11, %v400_v39 }
 0x138   : > { %v401_v18 = vpop.trf.xlu0 }
 0x139   : > { %418 = vst.msk [vmem:[%s847_s19 + $0x50] sm:$0xff] %vm407_vm11, %v401_v18 }
 0x13c   : > { %v402_v19 = vpop.trf.xlu0 }
 0x13d   : > { %419 = vst.msk [vmem:[%s847_s19 + $0x58] sm:$0xff] %vm407_vm11, %v402_v19 }
 0x140   : > { %v403_v38 = vpop.trf.xlu0 }
 0x141   : > { %420 = vst.msk [vmem:[%s847_s19 + $0x60] sm:$0xff] %vm407_vm11, %v403_v38 }
 0x144   : > { %v404_v40 = vpop.trf.xlu0 }
 0x145   : > { %421 = vst.msk [vmem:[%s847_s19 + $0x68] sm:$0xff] %vm407_vm11, %v404_v40 }
 0x148   : > { %v405_v41 = vpop.trf.xlu0 }
 0x149   : > { %422 = vst.msk [vmem:[%s847_s19 + $0x70] sm:$0xff] %vm407_vm11, %v405_v41 }
 0x14c   : > { %v406_v42 = vpop.trf.xlu0 }
 0x14d   : > { %423 = vst.msk [vmem:[%s847_s19 + $0x78] sm:$0xff] %vm407_vm11, %v406_v42 }
 0x14e PF: > { %p11_p8 = scmp.ge.s32.totalorder %s673_s11, 5   ;;  %s906_s6 = smov %s626_s7 }
 0x14f   : > { %s907_s7 = smov %s630_s8  ;;  %s908_s8 = smov %s683_s14 }
 0x150   : > { %s909_s9 = smov %s673_s11  ;;  %13 = sbr.rel (!%p11_p8) target bundleno = 3 (0x3), region = 64 }
 0x155   :  { %446 = vsyncpa [#allocation3], 1 }
 0x156   :  { %448 = vsyncpa [#allocation3 + $0x1], 1 }

</bundles_post_ra>
